<compile_context>
chip_gen: v7x
topology: tpu7x:2x2x1
jax: 0.10.0
libtpu: 0.0.40
codegen_flags: <defaults>
</compile_context>

<pallas_src>
import functools

import jax
import jax.numpy as jnp
from jax.experimental import pallas as pl
from jax.experimental.pallas import tpu as pltpu


# ---------------------------------------------------------------------------
# helpers
# ---------------------------------------------------------------------------
def _round_up(v, m):
    return ((v + m - 1) // m) * m


def _pad2(a, rows, cols):
    return jnp.pad(a, ((0, rows - a.shape[0]), (0, cols - a.shape[1])))


def _choose_tiles(n):
    """Pick (n_pad, tm, tk): tm multiple of 8, tk multiple of 128, both divide n_pad.

    Tiles are sized against v7x's 64 MiB physical / 32 MiB scoped VMEM budget
    (a (256, 512) bf16 adj tile is 256 KiB; total live VMEM stays << 32 MiB).
    """
    if n <= 256:
        n_pad = _round_up(max(n, 128), 128)   # 128 or 256
        return n_pad, n_pad, n_pad
    n_pad = _round_up(n, 512)
    return n_pad, 256, 512


# ---------------------------------------------------------------------------
# kernel: one GraphConv layer (+ optional fused Linear head)
# ---------------------------------------------------------------------------
def _gconv_kernel(*refs, f_in, has_head):
    if has_head:
        (adj_ref, xsrc_ref, xdst_ref, wcat_ref, b_ref,
         wl_ref, bl_ref, out_ref, cat_ref) = refs
    else:
        (adj_ref, xsrc_ref, xdst_ref, wcat_ref, b_ref,
         out_ref, cat_ref) = refs
        wl_ref = bl_ref = None

    k = pl.program_id(1)

    @pl.when(k == 0)
    def _init():
        cat_ref[...] = jnp.zeros_like(cat_ref)

    # Neighbor-sum accumulation: agg[i_tile] += A[i_tile, k_tile] @ X[k_tile].
    # adj streams from HBM as bf16 (exact small-int edge counts); f32 accumulate.
    cat_ref[:, :f_in] += jnp.dot(adj_ref[...].astype(jnp.float32), xsrc_ref[...],
                                 preferred_element_type=jnp.float32)

    @pl.when(k == pl.num_programs(1) - 1)
    def _finalize():
        # Fused rel/root GEMM: [agg | x_root] @ [w_rel ; w_root]  (f32 epilogue).
        cat_ref[:, f_in:] = xdst_ref[...]
        h = jnp.dot(cat_ref[...], wcat_ref[...],
                    preferred_element_type=jnp.float32) + b_ref[...]
        h = jnp.maximum(h, 0.0)
        if has_head:
            h = jnp.dot(h, wl_ref[...],
                        preferred_element_type=jnp.float32) + bl_ref[...]
        out_ref[...] = h.astype(out_ref.dtype)


def _graphconv_layer(adj, x, wcat, b, head=None, *, tm, tk):
    """out = relu([A@x | x] @ wcat + b)   (optionally followed by @wl + bl)."""
    n_pad = adj.shape[0]
    f_in = x.shape[1]          # already lane-padded (multiple of 128)
    f_mid = wcat.shape[1]
    f_out = head[0].shape[1] if head is not None else f_mid
    grid = (n_pad // tm, n_pad // tk)

    in_specs = [
        pl.BlockSpec((tm, tk), lambda i, k: (i, k)),            # adj tile (streams)
        pl.BlockSpec((tk, f_in), lambda i, k: (k, 0)),          # x rows as neighbors
        pl.BlockSpec((tm, f_in), lambda i, k: (i, 0)),          # x rows as root (resident over k)
        pl.BlockSpec((2 * f_in, f_mid), lambda i, k: (0, 0)),   # fused [w_rel; w_root], resident
        pl.BlockSpec((1, f_mid), lambda i, k: (0, 0)),          # bias, resident
    ]
    args = [adj, x, x, wcat, b]
    if head is not None:
        wl, bl = head
        in_specs += [pl.BlockSpec((f_mid, f_out), lambda i, k: (0, 0)),
                     pl.BlockSpec((1, f_out), lambda i, k: (0, 0))]
        args += [wl, bl]

    flops = 2 * n_pad * n_pad * f_in + 2 * n_pad * (2 * f_in) * f_mid
    if head is not None:
        flops += 2 * n_pad * f_mid * f_out
    bytes_accessed = int(sum(int(a.size) * a.dtype.itemsize for a in args)
                         + n_pad * f_out * 4)

    kernel = functools.partial(_gconv_kernel, f_in=f_in,
                               has_head=head is not None)

    return pl.pallas_call(
        kernel,
        out_shape=jax.ShapeDtypeStruct((n_pad, f_out), jnp.float32),
        grid_spec=pltpu.PrefetchScalarGridSpec(
            num_scalar_prefetch=0,
            grid=grid,
            in_specs=in_specs,
            out_specs=pl.BlockSpec((tm, f_out), lambda i, k: (i, 0)),
            scratch_shapes=[pltpu.VMEM((tm, 2 * f_in), jnp.float32)],
        ),
        compiler_params=pltpu.CompilerParams(
            dimension_semantics=("parallel", "arbitrary"),
            vmem_limit_bytes=32 * 1024 * 1024,
        ),
        cost_estimate=pl.CostEstimate(flops=int(flops), transcendentals=0,
                                      bytes_accessed=bytes_accessed),
    )(*args)


# ---------------------------------------------------------------------------
# forward pass
# ---------------------------------------------------------------------------
def encoder_gnn_forward(x, edge_index, params):
    """x: [N, F_in] f32; edge_index: [2, E] int32 (row 0 = src, row 1 = dst)."""
    n, f_in = x.shape
    hidden = params["w1_rel"].shape[1]
    out_ch = params["wl"].shape[1]

    # lane padding (multiples of 128) and node padding to the tile grid
    f_in_p = _round_up(max(f_in, 128), 128)
    hid_p = _round_up(max(hidden, 128), 128)
    out_p = _round_up(max(out_ch, 128), 128)
    n_pad, tm, tk = _choose_tiles(n)

    # Dense adjacency A[dst, src] += 1 per edge ('add' aggregation, no edge_weight).
    # Cast to bf16: exact for edge multiplicities <= 256, halves HBM traffic.
    src, dst = edge_index[0], edge_index[1]
    adj = jnp.zeros((n_pad, n_pad), jnp.float32).at[dst, src].add(1.0)
    adj = adj.astype(jnp.bfloat16)

    x_p = _pad2(x.astype(jnp.float32), n_pad, f_in_p)

    # Fused per-layer weights: Wcat = [w_rel ; w_root] (zero-padded to 128 lanes).
    wcat1 = jnp.concatenate([_pad2(params["w1_rel"], f_in_p, hid_p),
                             _pad2(params["w1_root"], f_in_p, hid_p)], axis=0)
    b1 = _pad2(params["b1"], 1, hid_p)
    wcat2 = jnp.concatenate([_pad2(params["w2_rel"], hid_p, hid_p),
                             _pad2(params["w2_root"], hid_p, hid_p)], axis=0)
    b2 = _pad2(params["b2"], 1, hid_p)
    wl = _pad2(params["wl"], hid_p, out_p)
    bl = _pad2(params["bl"], 1, out_p)

    h1 = _graphconv_layer(adj, x_p, wcat1, b1, tm=tm, tk=tk)
    out = _graphconv_layer(adj, h1, wcat2, b2, head=(wl, bl), tm=tm, tk=tk)
    return out[:n, :out_ch]


# ---------------------------------------------------------------------------
# params / reference / demo
# ---------------------------------------------------------------------------
def init_params(key, in_channels, hidden_channels, out_channels):
    ks = jax.random.split(key, 7)

    def glorot(k, fan_in, fan_out):
        lim = (6.0 / (fan_in + fan_out)) ** 0.5
        return jax.random.uniform(k, (fan_in, fan_out), jnp.float32, -lim, lim)

    return {
        # GraphConv layer 1: lin_rel (with bias) + lin_root (no bias)
        "w1_rel":  glorot(ks[0], in_channels, hidden_channels),
        "b1":      jnp.zeros((1, hidden_channels), jnp.float32),
        "w1_root": glorot(ks[1], in_channels, hidden_channels),
        # GraphConv layer 2
        "w2_rel":  glorot(ks[2], hidden_channels, hidden_channels),
        "b2":      jnp.zeros((1, hidden_channels), jnp.float32),
        "w2_root": glorot(ks[3], hidden_channels, hidden_channels),
        # Linear head
        "wl":      glorot(ks[4], hidden_channels, out_channels),
        "bl":      jax.random.uniform(ks[5], (1, out_channels), jnp.float32, -0.1, 0.1),
    }


def _reference(x, edge_index, params):
    n = x.shape[0]
    src, dst = edge_index[0], edge_index[1]
    adj = jnp.zeros((n, n), jnp.float32).at[dst, src].add(1.0)
    h1 = jax.nn.relu(adj @ x @ params["w1_rel"] + params["b1"] + x @ params["w1_root"])
    h2 = jax.nn.relu(adj @ h1 @ params["w2_rel"] + params["b2"] + h1 @ params["w2_root"])
    return h2 @ params["wl"] + params["bl"]


if __name__ == "__main__":
    N, F_IN, HIDDEN, OUT, E = 16, 4, 32, 8, 48

    key = jax.random.PRNGKey(0)
    k_x, k_e1, k_e2, k_p = jax.random.split(key, 4)

    x = jax.random.normal(k_x, (N, F_IN), jnp.float32)
    edge_index = jnp.stack([
        jax.random.randint(k_e1, (E,), 0, N, jnp.int32),   # src
        jax.random.randint(k_e2, (E,), 0, N, jnp.int32),   # dst
    ], axis=0)

    params = init_params(k_p, F_IN, HIDDEN, OUT)

    fwd = jax.jit(encoder_gnn_forward)
    out = fwd(x, edge_index, params)
    out = jax.block_until_ready(out)

    ref = _reference(x, edge_index, params)
    assert out.shape == (N, OUT), out.shape
    assert jnp.allclose(out, ref, atol=2e-4, rtol=2e-4), float(jnp.abs(out - ref).max())

    print("KERNEL_OK")
</pallas_src>

<mosaic_0001>
module attributes {stable_mosaic.version = 11 : i64} {
  func.func private @main(%arg0: i32) attributes {dimension_semantics = [#tpu.dimension_semantics<core_parallel>], iteration_bounds = array<i64: 2>, tpu.core_type = #tpu.core_type<sc_scalar_subcore>, window_params = []} {
    return
  }
}

module attributes {stable_mosaic.version = 11 : i64} {
  func.func private @main(%arg0: i32) attributes {dimension_semantics = [#tpu.dimension_semantics<core_parallel>], iteration_bounds = array<i64: 2>, tpu.core_type = #tpu.core_type<sc_scalar_subcore>, window_params = []} {
    return
  }
}

module attributes {stable_mosaic.version = 11 : i64} {
  func.func @_gconv_kernel(%arg0: i32, %arg1: i32, %arg2: memref<128x128xbf16, #tpu.memory_space<vmem>>, %arg3: memref<128x128xf32, #tpu.memory_space<vmem>>, %arg4: memref<128x128xf32, #tpu.memory_space<vmem>>, %arg5: memref<256x128xf32, #tpu.memory_space<vmem>>, %arg6: memref<1x128xf32, #tpu.memory_space<vmem>>, %arg7: memref<128x128xf32, #tpu.memory_space<vmem>>, %arg8: memref<128x256xf32, #tpu.memory_space<vmem>>) attributes {dimension_semantics = [#tpu.dimension_semantics<parallel>, #tpu.dimension_semantics<arbitrary>], iteration_bounds = array<i64: 1, 1>, scalar_prefetch = 0 : i64, scratch_operands = 1 : i64, tpu.core_type = #tpu.core_type<tc>, window_params = [{transform_indices = @transform_0, window_bounds = array<i64: 128, 128>}, {transform_indices = @transform_1, window_bounds = array<i64: 128, 128>}, {transform_indices = @transform_2, window_bounds = array<i64: 128, 128>}, {pipeline_mode = #tpu.pipeline_mode<synchronous>, transform_indices = @transform_3, window_bounds = array<i64: 256, 128>}, {pipeline_mode = #tpu.pipeline_mode<synchronous>, transform_indices = @transform_4, window_bounds = array<i64: 1, 128>}, {transform_indices = @transform_5, window_bounds = array<i64: 128, 128>}]} {
    %c0_i32 = arith.constant 0 : i32
    %0 = arith.cmpi eq, %arg1, %c0_i32 : i32
    %1 = arith.extui %0 : i1 to i32
    %c0_i32_0 = arith.constant 0 : i32
    %2 = arith.cmpi ne, %1, %c0_i32_0 : i32
    scf.if %2 {
      %cst_10 = arith.constant 0.000000e+00 : f32
      %13 = vector.broadcast %cst_10 : f32 to vector<128x256xf32>
      %c0_11 = arith.constant 0 : index
      %c0_12 = arith.constant 0 : index
      %14 = vector.load %arg8[%c0_11, %c0_12] : memref<128x256xf32, #tpu.memory_space<vmem>>, vector<128x256xf32>
      tpu.vector_store %arg8[%c0_11, %c0_12], %13 {strides = array<i32>} : memref<128x256xf32, #tpu.memory_space<vmem>>, vector<128x256xf32>,
    } else {
    }
    %c0 = arith.constant 0 : index
    %c0_1 = arith.constant 0 : index
    %3 = vector.load %arg8[%c0, %c0_1] : memref<128x256xf32, #tpu.memory_space<vmem>>, vector<128x128xf32>
    %c0_2 = arith.constant 0 : index
    %c0_3 = arith.constant 0 : index
    %4 = vector.load %arg2[%c0_2, %c0_3] : memref<128x128xbf16, #tpu.memory_space<vmem>>, vector<128x128xbf16>
    %5 = arith.extf %4 : vector<128x128xbf16> to vector<128x128xf32>
    %c0_4 = arith.constant 0 : index
    %c0_5 = arith.constant 0 : index
    %6 = vector.load %arg3[%c0_4, %c0_5] : memref<128x128xf32, #tpu.memory_space<vmem>>, vector<128x128xf32>
    %cst = arith.constant dense<0.000000e+00> : vector<128x128xf32>
    %7 = tpu.matmul %5, %6, %cst {dimension_numbers = #tpu.dot_dimension_numbers<[1], [0], [0], [1], [0, 0, 1, 1], [], []>} : vector<128x128xf32>, vector<128x128xf32>, vector<128x128xf32> -> vector<128x128xf32>
    %8 = arith.addf %3, %7 : vector<128x128xf32>
    %c0_6 = arith.constant 0 : index
    %c0_7 = arith.constant 0 : index
    %9 = vector.load %arg8[%c0_6, %c0_7] : memref<128x256xf32, #tpu.memory_space<vmem>>, vector<128x128xf32>
    tpu.vector_store %arg8[%c0_6, %c0_7], %8 {strides = array<i32>} : memref<128x256xf32, #tpu.memory_space<vmem>>, vector<128x128xf32>,
    %c0_i32_8 = arith.constant 0 : i32
    %10 = arith.cmpi eq, %arg1, %c0_i32_8 : i32
    %11 = arith.extui %10 : i1 to i32
    %c0_i32_9 = arith.constant 0 : i32
    %12 = arith.cmpi ne, %11, %c0_i32_9 : i32
    scf.if %12 {
      %c0_10 = arith.constant 0 : index
      %c0_11 = arith.constant 0 : index
      %13 = vector.load %arg4[%c0_10, %c0_11] : memref<128x128xf32, #tpu.memory_space<vmem>>, vector<128x128xf32>
      %c0_12 = arith.constant 0 : index
      %c128 = arith.constant 128 : index
      %14 = vector.load %arg8[%c0_12, %c128] : memref<128x256xf32, #tpu.memory_space<vmem>>, vector<128x128xf32>
      tpu.vector_store %arg8[%c0_12, %c128], %13 {strides = array<i32>} : memref<128x256xf32, #tpu.memory_space<vmem>>, vector<128x128xf32>,
      %c0_13 = arith.constant 0 : index
      %c0_14 = arith.constant 0 : index
      %15 = vector.load %arg8[%c0_13, %c0_14] : memref<128x256xf32, #tpu.memory_space<vmem>>, vector<128x256xf32>
      %c0_15 = arith.constant 0 : index
      %c0_16 = arith.constant 0 : index
      %16 = vector.load %arg5[%c0_15, %c0_16] : memref<256x128xf32, #tpu.memory_space<vmem>>, vector<256x128xf32>
      %cst_17 = arith.constant dense<0.000000e+00> : vector<128x128xf32>
      %17 = tpu.matmul %15, %16, %cst_17 {dimension_numbers = #tpu.dot_dimension_numbers<[1], [0], [0], [1], [0, 0, 1, 1], [], []>} : vector<128x256xf32>, vector<256x128xf32>, vector<128x128xf32> -> vector<128x128xf32>
      %c0_18 = arith.constant 0 : index
      %c0_19 = arith.constant 0 : index
      %18 = vector.load %arg6[%c0_18, %c0_19] : memref<1x128xf32, #tpu.memory_space<vmem>>, vector<1x128xf32>
      %19 = vector.broadcast %18 : vector<1x128xf32> to vector<128x128xf32>
      %20 = arith.addf %17, %19 : vector<128x128xf32>
      %cst_20 = arith.constant 0.000000e+00 : f32
      %21 = vector.broadcast %cst_20 : f32 to vector<128x128xf32>
      %22 = arith.maximumf %20, %21 : vector<128x128xf32>
      %c0_21 = arith.constant 0 : index
      %c0_22 = arith.constant 0 : index
      %23 = vector.load %arg7[%c0_21, %c0_22] : memref<128x128xf32, #tpu.memory_space<vmem>>, vector<128x128xf32>
      tpu.vector_store %arg7[%c0_21, %c0_22], %22 {strides = array<i32>} : memref<128x128xf32, #tpu.memory_space<vmem>>, vector<128x128xf32>,
    } else {
    }
    return
  }
  func.func @transform_0(%arg0: i32, %arg1: i32) -> (i32, i32) {
    %c0_i32 = arith.constant 0 : i32
    return %arg0, %arg1 : i32, i32
  }
  func.func @transform_1(%arg0: i32, %arg1: i32) -> (i32, i32) {
    %c0_i32 = arith.constant 0 : i32
    %c0_i32_0 = arith.constant 0 : i32
    return %arg1, %c0_i32 : i32, i32
  }
  func.func @transform_2(%arg0: i32, %arg1: i32) -> (i32, i32) {
    %c0_i32 = arith.constant 0 : i32
    %c0_i32_0 = arith.constant 0 : i32
    return %arg0, %c0_i32 : i32, i32
  }
  func.func @transform_3(%arg0: i32, %arg1: i32) -> (i32, i32) {
    %c0_i32 = arith.constant 0 : i32
    %c0_i32_0 = arith.constant 0 : i32
    %c0_i32_1 = arith.constant 0 : i32
    return %c0_i32, %c0_i32_0 : i32, i32
  }
  func.func @transform_4(%arg0: i32, %arg1: i32) -> (i32, i32) {
    %c0_i32 = arith.constant 0 : i32
    %c0_i32_0 = arith.constant 0 : i32
    %c0_i32_1 = arith.constant 0 : i32
    return %c0_i32, %c0_i32_0 : i32, i32
  }
  func.func @transform_5(%arg0: i32, %arg1: i32) -> (i32, i32) {
    %c0_i32 = arith.constant 0 : i32
    %c0_i32_0 = arith.constant 0 : i32
    return %arg0, %c0_i32 : i32, i32
  }
}

module attributes {stable_mosaic.version = 11 : i64} {
  func.func @_gconv_kernel(%arg0: i32, %arg1: i32, %arg2: memref<128x128xbf16, #tpu.memory_space<vmem>>, %arg3: memref<128x128xf32, #tpu.memory_space<vmem>>, %arg4: memref<128x128xf32, #tpu.memory_space<vmem>>, %arg5: memref<256x128xf32, #tpu.memory_space<vmem>>, %arg6: memref<1x128xf32, #tpu.memory_space<vmem>>, %arg7: memref<128x128xf32, #tpu.memory_space<vmem>>, %arg8: memref<1x128xf32, #tpu.memory_space<vmem>>, %arg9: memref<128x128xf32, #tpu.memory_space<vmem>>, %arg10: memref<128x256xf32, #tpu.memory_space<vmem>>) attributes {dimension_semantics = [#tpu.dimension_semantics<parallel>, #tpu.dimension_semantics<arbitrary>], iteration_bounds = array<i64: 1, 1>, scalar_prefetch = 0 : i64, scratch_operands = 1 : i64, tpu.core_type = #tpu.core_type<tc>, window_params = [{transform_indices = @transform_0, window_bounds = array<i64: 128, 128>}, {transform_indices = @transform_1, window_bounds = array<i64: 128, 128>}, {transform_indices = @transform_2, window_bounds = array<i64: 128, 128>}, {pipeline_mode = #tpu.pipeline_mode<synchronous>, transform_indices = @transform_3, window_bounds = array<i64: 256, 128>}, {pipeline_mode = #tpu.pipeline_mode<synchronous>, transform_indices = @transform_4, window_bounds = array<i64: 1, 128>}, {pipeline_mode = #tpu.pipeline_mode<synchronous>, transform_indices = @transform_5, window_bounds = array<i64: 128, 128>}, {pipeline_mode = #tpu.pipeline_mode<synchronous>, transform_indices = @transform_6, window_bounds = array<i64: 1, 128>}, {transform_indices = @transform_7, window_bounds = array<i64: 128, 128>}]} {
    %c0_i32 = arith.constant 0 : i32
    %0 = arith.cmpi eq, %arg1, %c0_i32 : i32
    %1 = arith.extui %0 : i1 to i32
    %c0_i32_0 = arith.constant 0 : i32
    %2 = arith.cmpi ne, %1, %c0_i32_0 : i32
    scf.if %2 {
      %cst_10 = arith.constant 0.000000e+00 : f32
      %13 = vector.broadcast %cst_10 : f32 to vector<128x256xf32>
      %c0_11 = arith.constant 0 : index
      %c0_12 = arith.constant 0 : index
      %14 = vector.load %arg10[%c0_11, %c0_12] : memref<128x256xf32, #tpu.memory_space<vmem>>, vector<128x256xf32>
      tpu.vector_store %arg10[%c0_11, %c0_12], %13 {strides = array<i32>} : memref<128x256xf32, #tpu.memory_space<vmem>>, vector<128x256xf32>,
    } else {
    }
    %c0 = arith.constant 0 : index
    %c0_1 = arith.constant 0 : index
    %3 = vector.load %arg10[%c0, %c0_1] : memref<128x256xf32, #tpu.memory_space<vmem>>, vector<128x128xf32>
    %c0_2 = arith.constant 0 : index
    %c0_3 = arith.constant 0 : index
    %4 = vector.load %arg2[%c0_2, %c0_3] : memref<128x128xbf16, #tpu.memory_space<vmem>>, vector<128x128xbf16>
    %5 = arith.extf %4 : vector<128x128xbf16> to vector<128x128xf32>
    %c0_4 = arith.constant 0 : index
    %c0_5 = arith.constant 0 : index
    %6 = vector.load %arg3[%c0_4, %c0_5] : memref<128x128xf32, #tpu.memory_space<vmem>>, vector<128x128xf32>
    %cst = arith.constant dense<0.000000e+00> : vector<128x128xf32>
    %7 = tpu.matmul %5, %6, %cst {dimension_numbers = #tpu.dot_dimension_numbers<[1], [0], [0], [1], [0, 0, 1, 1], [], []>} : vector<128x128xf32>, vector<128x128xf32>, vector<128x128xf32> -> vector<128x128xf32>
    %8 = arith.addf %3, %7 : vector<128x128xf32>
    %c0_6 = arith.constant 0 : index
    %c0_7 = arith.constant 0 : index
    %9 = vector.load %arg10[%c0_6, %c0_7] : memref<128x256xf32, #tpu.memory_space<vmem>>, vector<128x128xf32>
    tpu.vector_store %arg10[%c0_6, %c0_7], %8 {strides = array<i32>} : memref<128x256xf32, #tpu.memory_space<vmem>>, vector<128x128xf32>,
    %c0_i32_8 = arith.constant 0 : i32
    %10 = arith.cmpi eq, %arg1, %c0_i32_8 : i32
    %11 = arith.extui %10 : i1 to i32
    %c0_i32_9 = arith.constant 0 : i32
    %12 = arith.cmpi ne, %11, %c0_i32_9 : i32
    scf.if %12 {
      %c0_10 = arith.constant 0 : index
      %c0_11 = arith.constant 0 : index
      %13 = vector.load %arg4[%c0_10, %c0_11] : memref<128x128xf32, #tpu.memory_space<vmem>>, vector<128x128xf32>
      %c0_12 = arith.constant 0 : index
      %c128 = arith.constant 128 : index
      %14 = vector.load %arg10[%c0_12, %c128] : memref<128x256xf32, #tpu.memory_space<vmem>>, vector<128x128xf32>
      tpu.vector_store %arg10[%c0_12, %c128], %13 {strides = array<i32>} : memref<128x256xf32, #tpu.memory_space<vmem>>, vector<128x128xf32>,
      %c0_13 = arith.constant 0 : index
      %c0_14 = arith.constant 0 : index
      %15 = vector.load %arg10[%c0_13, %c0_14] : memref<128x256xf32, #tpu.memory_space<vmem>>, vector<128x256xf32>
      %c0_15 = arith.constant 0 : index
      %c0_16 = arith.constant 0 : index
      %16 = vector.load %arg5[%c0_15, %c0_16] : memref<256x128xf32, #tpu.memory_space<vmem>>, vector<256x128xf32>
      %cst_17 = arith.constant dense<0.000000e+00> : vector<128x128xf32>
      %17 = tpu.matmul %15, %16, %cst_17 {dimension_numbers = #tpu.dot_dimension_numbers<[1], [0], [0], [1], [0, 0, 1, 1], [], []>} : vector<128x256xf32>, vector<256x128xf32>, vector<128x128xf32> -> vector<128x128xf32>
      %c0_18 = arith.constant 0 : index
      %c0_19 = arith.constant 0 : index
      %18 = vector.load %arg6[%c0_18, %c0_19] : memref<1x128xf32, #tpu.memory_space<vmem>>, vector<1x128xf32>
      %19 = vector.broadcast %18 : vector<1x128xf32> to vector<128x128xf32>
      %20 = arith.addf %17, %19 : vector<128x128xf32>
      %cst_20 = arith.constant 0.000000e+00 : f32
      %21 = vector.broadcast %cst_20 : f32 to vector<128x128xf32>
      %22 = arith.maximumf %20, %21 : vector<128x128xf32>
      %c0_21 = arith.constant 0 : index
      %c0_22 = arith.constant 0 : index
      %23 = vector.load %arg7[%c0_21, %c0_22] : memref<128x128xf32, #tpu.memory_space<vmem>>, vector<128x128xf32>
      %cst_23 = arith.constant dense<0.000000e+00> : vector<128x128xf32>
      %24 = tpu.matmul %22, %23, %cst_23 {dimension_numbers = #tpu.dot_dimension_numbers<[1], [0], [0], [1], [0, 0, 1, 1], [], []>} : vector<128x128xf32>, vector<128x128xf32>, vector<128x128xf32> -> vector<128x128xf32>
      %c0_24 = arith.constant 0 : index
      %c0_25 = arith.constant 0 : index
      %25 = vector.load %arg8[%c0_24, %c0_25] : memref<1x128xf32, #tpu.memory_space<vmem>>, vector<1x128xf32>
      %26 = vector.broadcast %25 : vector<1x128xf32> to vector<128x128xf32>
      %27 = arith.addf %24, %26 : vector<128x128xf32>
      %c0_26 = arith.constant 0 : index
      %c0_27 = arith.constant 0 : index
      %28 = vector.load %arg9[%c0_26, %c0_27] : memref<128x128xf32, #tpu.memory_space<vmem>>, vector<128x128xf32>
      tpu.vector_store %arg9[%c0_26, %c0_27], %27 {strides = array<i32>} : memref<128x128xf32, #tpu.memory_space<vmem>>, vector<128x128xf32>,
    } else {
    }
    return
  }
  func.func @transform_0(%arg0: i32, %arg1: i32) -> (i32, i32) {
    %c0_i32 = arith.constant 0 : i32
    return %arg0, %arg1 : i32, i32
  }
  func.func @transform_1(%arg0: i32, %arg1: i32) -> (i32, i32) {
    %c0_i32 = arith.constant 0 : i32
    %c0_i32_0 = arith.constant 0 : i32
    return %arg1, %c0_i32 : i32, i32
  }
  func.func @transform_2(%arg0: i32, %arg1: i32) -> (i32, i32) {
    %c0_i32 = arith.constant 0 : i32
    %c0_i32_0 = arith.constant 0 : i32
    return %arg0, %c0_i32 : i32, i32
  }
  func.func @transform_3(%arg0: i32, %arg1: i32) -> (i32, i32) {
    %c0_i32 = arith.constant 0 : i32
    %c0_i32_0 = arith.constant 0 : i32
    %c0_i32_1 = arith.constant 0 : i32
    return %c0_i32, %c0_i32_0 : i32, i32
  }
  func.func @transform_4(%arg0: i32, %arg1: i32) -> (i32, i32) {
    %c0_i32 = arith.constant 0 : i32
    %c0_i32_0 = arith.constant 0 : i32
    %c0_i32_1 = arith.constant 0 : i32
    return %c0_i32, %c0_i32_0 : i32, i32
  }
  func.func @transform_5(%arg0: i32, %arg1: i32) -> (i32, i32) {
    %c0_i32 = arith.constant 0 : i32
    %c0_i32_0 = arith.constant 0 : i32
    %c0_i32_1 = arith.constant 0 : i32
    return %c0_i32, %c0_i32_0 : i32, i32
  }
  func.func @transform_6(%arg0: i32, %arg1: i32) -> (i32, i32) {
    %c0_i32 = arith.constant 0 : i32
    %c0_i32_0 = arith.constant 0 : i32
    %c0_i32_1 = arith.constant 0 : i32
    return %c0_i32, %c0_i32_0 : i32, i32
  }
  func.func @transform_7(%arg0: i32, %arg1: i32) -> (i32, i32) {
    %c0_i32 = arith.constant 0 : i32
    %c0_i32_0 = arith.constant 0 : i32
    return %arg0, %c0_i32 : i32, i32
  }
}

</mosaic_0001>

<bundles_post_ra>
// kernel: encoder_gnn_forward.2
= control target key start
LH: loop header
LB: loop body
LE: loop exit
PB: predicated region body
PF: predicated region fallthrough
CT: control target
= control target key end

     0   :  { %s1235_s1 = inlined_call_operand.vmem [shape: f32[128,128], index: 1, kind: input, shape index: {}, may-alias: {1,2}]   ;;  %s1236_s0 = inlined_call_operand.vmem [shape: bf16[128,128], index: 0, kind: input, shape index: {}]   ;;  %s1237_s3 = inlined_call_operand.vmem [shape: f32[256,128], index: 3, kind: input, shape index: {}]   ;;  %s1238_s2 = inlined_call_operand.vmem [shape: f32[128,128], index: 2, kind: input, shape index: {}, may-alias: {1,2}]   ;;  %s1239_s4 = inlined_call_operand.vmem [shape: f32[1,128], index: 4, kind: input, shape index: {}]   ;;  %s1240_s5 = inlined_call_operand.vmem [shape: f32[128,128], index: 5, kind: output, shape index: {}]  }
   0x1   :  { %v104_v0 = vld [vmem:[%s1235_s1] sm:$0xff]  ;;  %v105_v1 = vld [vmem:[%s1235_s1 + $0x8] sm:$0xff]  ;;  %v106_v2 = vld [vmem:[%s1235_s1 + $0x10] sm:$0xff] }
   0x2   :  { %v792_v3 = vpack.c.bf16 %v105_v1, %v104_v0  ;;  %v107_v4 = vld [vmem:[%s1235_s1 + $0x18] sm:$0xff]  ;;  %v108_v6 = vld [vmem:[%s1235_s1 + $0x20] sm:$0xff]  ;;  %v109_v7 = vld [vmem:[%s1235_s1 + $0x28] sm:$0xff] }
   0x3   :  { %v796_v5 = vpack.c.bf16 %v107_v4, %v106_v2  ;;  %v800_v8 = vpack.c.bf16 %v109_v7, %v108_v6  ;;  %v923_v9 = vld [vmem:[%s1236_s0] sm:$0xff]   ;;  %v110_v10 = vld [vmem:[%s1235_s1 + $0x30] sm:$0xff]  ;;  %v111_v11 = vld [vmem:[%s1235_s1 + $0x38] sm:$0xff] }
   0x4   :  { %793 = vmatprep.subr.bf16.mxu0 %v792_v3  ;;  %v587_v12 = vunpack.c.l.bf16 %v923_v9  ;;  %v380_v13 = vld [vmem:[%s1237_s3 + $0x80] sm:$0xff]  ;;  %v381_v14 = vld [vmem:[%s1237_s3 + $0x88] sm:$0xff]  ;;  %v804_v16 = vpack.c.bf16 %v111_v11, %v110_v10  ;;  %v382_v18 = vld [vmem:[%s1237_s3 + $0x90] sm:$0xff]  ;;  %v588_v0 = vunpack.c.h.bf16 %v923_v9 }
   0x5   :  { %795 = vmatpush3.bf16.msra.mxu0 %v792_v3  ;;  %v364_v15 = vld [vmem:[%s1237_s3] sm:$0xff]  ;;  %v365_v17 = vld [vmem:[%s1237_s3 + $0x8] sm:$0xff]  ;;  %v383_v19 = vld [vmem:[%s1237_s3 + $0x98] sm:$0xff]  ;;  %v956_v22 = vpack.c.bf16 %v381_v14, %v380_v13 }
   0x6   :  { %797 = vmatprep.subr.bf16.mxu0 %v796_v5  ;;  %768 = vmatprep.mubr.f32.mxu0 %v587_v12  ;;  %v112_v20 = vld [vmem:[%s1235_s1 + $0x40] sm:$0xff]  ;;  %v113_v21 = vld [vmem:[%s1235_s1 + $0x48] sm:$0xff]  ;;  %v958_v23 = vpack.c.bf16 %v365_v17, %v364_v15  ;;  %v960_v24 = vpack.c.bf16 %v383_v19, %v382_v18  ;;  %v366_v25 = vld [vmem:[%s1237_s3 + $0x10] sm:$0xff] }
   0x7   :  { %v367_v26 = vld [vmem:[%s1237_s3 + $0x18] sm:$0xff]  ;;  %856 = vmatprep.subr.bf16.mxu1 %v956_v22  ;;  %v808_v27 = vpack.c.bf16 %v113_v21, %v112_v20  ;;  %v384_v28 = vld [vmem:[%s1237_s3 + $0xa0] sm:$0xff]  ;;  %v385_v29 = vld [vmem:[%s1237_s3 + $0xa8] sm:$0xff] }
   0x8   :  { %864 = vmatpush3.bf16.msra.mxu1 %v958_v23  ;;  %v114_v30 = vld [vmem:[%s1235_s1 + $0x50] sm:$0xff]  ;;  %v115_v31 = vld [vmem:[%s1235_s1 + $0x58] sm:$0xff]  ;;  %v983_v32 = vpack.c.bf16 %v367_v26, %v366_v25  ;;  %v985_v33 = vpack.c.bf16 %v385_v29, %v384_v28  ;;  %v368_v34 = vld [vmem:[%s1237_s3 + $0x20] sm:$0xff] }
   0x9   :  { %799 = vmatpush3.bf16.msra.mxu0 %v796_v5  ;;  %857 = vmatprep.subr.bf16.mxu1 %v960_v24  ;;  %v369_v35 = vld [vmem:[%s1237_s3 + $0x28] sm:$0xff]  ;;  %v812_v36 = vpack.c.bf16 %v115_v31, %v114_v30  ;;  %v386_v37 = vld [vmem:[%s1237_s3 + $0xb0] sm:$0xff]  ;;  %v387_v38 = vld [vmem:[%s1237_s3 + $0xb8] sm:$0xff] }
   0xa   :  { %801 = vmatprep.subr.bf16.mxu0 %v800_v8  ;;  %v116_v39 = vld [vmem:[%s1235_s1 + $0x60] sm:$0xff]  ;;  %v117_v40 = vld [vmem:[%s1235_s1 + $0x68] sm:$0xff]  ;;  %v1007_v41 = vpack.c.bf16 %v369_v35, %v368_v34  ;;  %v1009_v42 = vpack.c.bf16 %v387_v38, %v386_v37  ;;  %v370_v43 = vld [vmem:[%s1237_s3 + $0x30] sm:$0xff] }
   0xb   :  { %v371_v44 = vld [vmem:[%s1237_s3 + $0x38] sm:$0xff]  ;;  %v816_v45 = vpack.c.bf16 %v117_v40, %v116_v39  ;;  %v388_v46 = vld [vmem:[%s1237_s3 + $0xc0] sm:$0xff]  ;;  %v389_v47 = vld [vmem:[%s1237_s3 + $0xc8] sm:$0xff] }
   0xc   :  { %865 = vmatpush3.bf16.msra.mxu1 %v983_v32  ;;  %v118_v48 = vld [vmem:[%s1235_s1 + $0x70] sm:$0xff]  ;;  %v119_v49 = vld [vmem:[%s1235_s1 + $0x78] sm:$0xff]  ;;  %v1031_v50 = vpack.c.bf16 %v371_v44, %v370_v43  ;;  %v1033_v51 = vpack.c.bf16 %v389_v47, %v388_v46  ;;  %v372_v52 = vld [vmem:[%s1237_s3 + $0x40] sm:$0xff] }
   0xd   :  { %803 = vmatpush3.bf16.msra.mxu0 %v800_v8  ;;  %858 = vmatprep.subr.bf16.mxu1 %v985_v33  ;;  %v373_v53 = vld [vmem:[%s1237_s3 + $0x48] sm:$0xff]  ;;  %v820_v54 = vpack.c.bf16 %v119_v49, %v118_v48  ;;  %v390_v55 = vld [vmem:[%s1237_s3 + $0xd0] sm:$0xff]  ;;  %v391_v56 = vld [vmem:[%s1237_s3 + $0xd8] sm:$0xff] }
   0xe   :  { %805 = vmatprep.subr.bf16.mxu0 %v804_v16  ;;  %v1049_v57 = vpack.c.bf16 %v373_v53, %v372_v52  ;;  %v1051_v58 = vpack.c.bf16 %v391_v56, %v390_v55  ;;  %v374_v59 = vld [vmem:[%s1237_s3 + $0x50] sm:$0xff]  ;;  %v375_v60 = vld [vmem:[%s1237_s3 + $0x58] sm:$0xff]  ;;  %v617_v61 = vld [vmem:[%s1236_s0 + $0x8] sm:$0xff]  }
   0xf   :  { %v392_v62 = vld [vmem:[%s1237_s3 + $0xe0] sm:$0xff]  ;;  %v393_v63 = vld [vmem:[%s1237_s3 + $0xe8] sm:$0xff]  ;;  %v846_v1 = vpack.c.bf16 %v375_v60, %v374_v59  ;;  %v591_v2 = vunpack.c.l.bf16 %v617_v61  ;;  %v618_v6 = vld [vmem:[%s1236_s0 + $0x10] sm:$0xff]   ;;  %v592_v9 = vunpack.c.h.bf16 %v617_v61 }
  0x10   :  { %866 = vmatpush3.bf16.msra.mxu1 %v1007_v41  ;;  %v848_v3 = vpack.c.bf16 %v393_v63, %v392_v62  ;;  %v376_v4 = vld [vmem:[%s1237_s3 + $0x60] sm:$0xff]  ;;  %v377_v5 = vld [vmem:[%s1237_s3 + $0x68] sm:$0xff]  ;;  %v394_v7 = vld [vmem:[%s1237_s3 + $0xf0] sm:$0xff]  ;;  %v595_v11 = vunpack.c.l.bf16 %v618_v6 }
  0x11   :  { %807 = vmatpush3.bf16.msra.mxu0 %v804_v16  ;;  %859 = vmatprep.subr.bf16.mxu1 %v1009_v42  ;;  %v395_v8 = vld [vmem:[%s1237_s3 + $0xf8] sm:$0xff]  ;;  %v850_v10 = vpack.c.bf16 %v377_v5, %v376_v4  ;;  %v378_v13 = vld [vmem:[%s1237_s3 + $0x70] sm:$0xff]  ;;  %v596_v16 = vunpack.c.h.bf16 %v618_v6  ;;  %v620_v19 = vld [vmem:[%s1236_s0 + $0x20] sm:$0xff]  }
  0x12   :  { %809 = vmatprep.subr.bf16.mxu0 %v808_v27  ;;  %v852_v12 = vpack.c.bf16 %v395_v8, %v394_v7  ;;  %v379_v14 = vld [vmem:[%s1237_s3 + $0x78] sm:$0xff]  ;;  %v603_v21 = vunpack.c.l.bf16 %v620_v19  ;;  %v622_v25 = vld [vmem:[%s1236_s0 + $0x30] sm:$0xff]   ;;  %v301_v35 = vld [vmem:[%s1238_s2 + $0x8] sm:$0xff] }
  0x13   :  { %v619_v15 = vld [vmem:[%s1236_s0 + $0x18] sm:$0xff]   ;;  %v854_v17 = vpack.c.bf16 %v379_v14, %v378_v13  ;;  %v612_v29 = vunpack.c.h.bf16 %v622_v25  ;;  %v302_v38 = vld [vmem:[%s1238_s2 + $0x10] sm:$0xff]  ;;  %v309_v53 = vld [vmem:[%s1238_s2 + $0x48] sm:$0xff] }
  0x14   :  { %867 = vmatpush3.bf16.msra.mxu1 %v1031_v50  ;;  %v599_v18 = vunpack.c.l.bf16 %v619_v15  ;;  %v600_v20 = vunpack.c.h.bf16 %v619_v15  ;;  %v623_v28 = vld [vmem:[%s1236_s0 + $0x38] sm:$0xff]   ;;  %v310_v56 = vld [vmem:[%s1238_s2 + $0x50] sm:$0xff]  ;;  %v312_v60 = vld [vmem:[%s1238_s2 + $0x60] sm:$0xff] }
  0x15   :  { %811 = vmatpush3.bf16.msra.mxu0 %v808_v27  ;;  %860 = vmatprep.subr.bf16.mxu1 %v1033_v51  ;;  %v611_v27 = vunpack.c.l.bf16 %v622_v25  ;;  %v615_v30 = vunpack.c.l.bf16 %v623_v28  ;;  %v616_v31 = vunpack.c.h.bf16 %v623_v28  ;;  %v307_v47 = vld [vmem:[%s1238_s2 + $0x38] sm:$0xff]  ;;  %v313_v61 = vld [vmem:[%s1238_s2 + $0x68] sm:$0xff]  ;;  %v314_v62 = vld [vmem:[%s1238_s2 + $0x70] sm:$0xff] }
  0x16   :  { %813 = vmatprep.subr.bf16.mxu0 %v812_v36  ;;  %v311_v59 = vld [vmem:[%s1238_s2 + $0x58] sm:$0xff] }
  0x17   :  { %v315_v63 = vld [vmem:[%s1238_s2 + $0x78] sm:$0xff] }
  0x18   :  { %868 = vmatpush3.bf16.msra.mxu1 %v1049_v57 }
  0x19   :  { %815 = vmatpush3.bf16.msra.mxu0 %v812_v36  ;;  %861 = vmatprep.subr.bf16.mxu1 %v1051_v58 }
  0x1a   :  { %817 = vmatprep.subr.bf16.mxu0 %v816_v45 }
  0x1c   :  { %869 = vmatpush3.bf16.msra.mxu1 %v846_v1 }
  0x1d   :  { %819 = vmatpush3.bf16.msra.mxu0 %v816_v45  ;;  %862 = vmatprep.subr.bf16.mxu1 %v848_v3  ;;  %v306_v45 = vld [vmem:[%s1238_s2 + $0x30] sm:$0xff] }
  0x1e   :  { %821 = vmatprep.subr.bf16.mxu0 %v820_v54 }
  0x20   :  { %870 = vmatpush3.bf16.msra.mxu1 %v850_v10 }
  0x21   :  { %823 = vmatpush3.bf16.msra.mxu0 %v820_v54  ;;  %863 = vmatprep.subr.bf16.mxu1 %v852_v12 }
  0x22   :  { %825 = vmatprep.subr.bf16.mxu0 %v956_v22  ;;  %v621_v22 = vld [vmem:[%s1236_s0 + $0x28] sm:$0xff]  }
  0x23   :  { %v608_v26 = vunpack.c.h.bf16 %v621_v22 }
  0x24   :  { %769 = vmatmul.mubr.f32.vlgmr.msra.gmra.mrb[0].mxu0 %v588_v0  ;;  %871 = vmatpush3.bf16.msra.mxu1 %v854_v17 }
  0x25   :  { %771 = vmatprep.mubr.f32.mxu0 %v591_v2  ;;  %827 = vmatpush3.bf16.msra.mxu0 %v958_v23  ;;  %v604_v23 = vunpack.c.h.bf16 %v620_v19 }
  0x26   :  { %829 = vmatprep.subr.bf16.mxu0 %v960_v24  ;;  %v607_v24 = vunpack.c.l.bf16 %v621_v22 }
  0x28   :  { %772 = vmatmul.mubr.f32.gmra.mrb[2].mxu0 %v592_v9 }
  0x29   :  { %774 = vmatprep.mubr.f32.mxu0 %v595_v11  ;;  %831 = vmatpush3.bf16.msra.mxu0 %v983_v32  ;;  %v300_v32 = vld [vmem:[%s1238_s2] sm:$0xff] }
  0x2a   :  { %833 = vmatprep.subr.bf16.mxu0 %v985_v33  ;;  %v304_v33 = vld [vmem:[%s1238_s2 + $0x20] sm:$0xff] }
  0x2b   :  { %487 = vmatprep.mubr.f32.mxu1 %v304_v33 }
  0x2c   :  { %775 = vmatmul.mubr.f32.gmra.mrb[4].mxu0 %v596_v16 }
  0x2d   :  { %777 = vmatprep.mubr.f32.mxu0 %v599_v18  ;;  %835 = vmatpush3.bf16.msra.mxu0 %v1007_v41  ;;  %v303_v41 = vld [vmem:[%s1238_s2 + $0x18] sm:$0xff] }
  0x2e   :  { %837 = vmatprep.subr.bf16.mxu0 %v1009_v42  ;;  %v305_v42 = vld [vmem:[%s1238_s2 + $0x28] sm:$0xff] }
  0x30   :  { %778 = vmatmul.mubr.f32.gmra.mrb[6].mxu0 %v600_v20 }
  0x31   :  { %780 = vmatprep.mubr.f32.mxu0 %v603_v21  ;;  %839 = vmatpush3.bf16.msra.mxu0 %v1031_v50  ;;  %v308_v50 = vld [vmem:[%s1238_s2 + $0x40] sm:$0xff] }
  0x32   :  { %841 = vmatprep.subr.bf16.mxu0 %v1033_v51 }
  0x34   :  { %781 = vmatmul.mubr.f32.gmra.mrb[8].mxu0 %v604_v23 }
  0x35   :  { %783 = vmatprep.mubr.f32.mxu0 %v607_v24  ;;  %843 = vmatpush3.bf16.msra.mxu0 %v1049_v57 }
  0x36   :  { %845 = vmatprep.subr.bf16.mxu0 %v1051_v58 }
  0x38   :  { %784 = vmatmul.mubr.f32.gmra.mrb[10].mxu0 %v608_v26 }
  0x39   :  { %786 = vmatprep.mubr.f32.mxu0 %v611_v27  ;;  %847 = vmatpush3.bf16.msra.mxu0 %v846_v1  ;;  %v1169_v1 = vld [vmem:[%s1239_s4] ss:$0 sm:$0xff] }
  0x3a   :  { %849 = vmatprep.subr.bf16.mxu0 %v848_v3 }
  0x3c   :  { %787 = vmatmul.mubr.f32.gmra.mrb[12].mxu0 %v612_v29 }
  0x3d   :  { %789 = vmatprep.mubr.f32.mxu0 %v615_v30  ;;  %851 = vmatpush3.bf16.msra.mxu0 %v850_v10 }
  0x3e   :  { %853 = vmatprep.subr.bf16.mxu0 %v852_v12 }
  0x40   :  { %790 = vmatmul.mubr.f32.gmra.mrb[14].mxu0 %v616_v31 }
  0x41   :  { %855 = vmatpush3.bf16.msra.mxu0 %v854_v17  ;;  %467 = vmatprep.mubr.f32.mxu0 %v300_v32 }
  0xf7   :  { %v770_v34 = vpop.f32.mrb[0].mxu0 }
  0xf8   :  { %v186_v36 = vpop.f32.mrb[1].mxu0 }
  0xf9   :  { %468 = vmatmul.mubr.f32.vlgmr.msra.gmra.mrb[16].mxu0 %v186_v36 }
  0xfa   :  { %472 = vmatprep.mubr.f32.mxu0 %v301_v35 }
  0xfb   :  { %v773_v37 = vpop.f32.mrb[2].mxu0 }
  0xfc   :  { %v196_v39 = vpop.f32.mrb[3].mxu0 }
  0xfd   :  { %473 = vmatmul.mubr.f32.gmra.mrb[18].mxu0 %v770_v34 }
  0xfe   :  { %477 = vmatprep.mubr.f32.mxu0 %v302_v38 }
  0xff   :  { %v776_v40 = vpop.f32.mrb[4].mxu0 }
 0x100   :  { %v206_v43 = vpop.f32.mrb[5].mxu0 }
 0x101   :  { %478 = vmatmul.mubr.f32.gmra.mrb[20].mxu0 %v196_v39  ;;  %488 = vmatmul.mubr.f32.vlgmr.msra.gmra.mrb[0].mxu1 %v206_v43 }
 0x102   :  { %482 = vmatprep.mubr.f32.mxu0 %v303_v41  ;;  %492 = vmatprep.mubr.f32.mxu1 %v305_v42 }
 0x103   :  { %v779_v44 = vpop.f32.mrb[6].mxu0 }
 0x104   :  { %v216_v46 = vpop.f32.mrb[7].mxu0 }
 0x105   :  { %483 = vmatmul.mubr.f32.gmra.mrb[22].mxu0 %v773_v37  ;;  %493 = vmatmul.mubr.f32.gmra.mrb[2].mxu1 %v776_v40 }
 0x106   :  { %497 = vmatprep.mubr.f32.mxu1 %v306_v45 }
 0x107   :  { %v782_v48 = vpop.f32.mrb[8].mxu0 }
 0x108   :  { %v226_v49 = vpop.f32.mrb[9].mxu0 }
 0x109   :  { %498 = vmatmul.mubr.f32.gmra.mrb[4].mxu1 %v216_v46 }
 0x10a   :  { %502 = vmatprep.mubr.f32.mxu1 %v307_v47 }
 0x10b   :  { %v785_v51 = vpop.f32.mrb[10].mxu0 }
 0x10c   :  { %v236_v52 = vpop.f32.mrb[11].mxu0 }
 0x10d   :  { %503 = vmatmul.mubr.f32.gmra.mrb[6].mxu1 %v779_v44 }
 0x10e   :  { %507 = vmatprep.mubr.f32.mxu1 %v308_v50 }
 0x10f   :  { %v788_v54 = vpop.f32.mrb[12].mxu0 }
 0x110   :  { %v246_v55 = vpop.f32.mrb[13].mxu0 }
 0x111   :  { %508 = vmatmul.mubr.f32.gmra.mrb[8].mxu1 %v226_v49 }
 0x112   :  { %512 = vmatprep.mubr.f32.mxu1 %v309_v53 }
 0x113   :  { %v791_v57 = vpop.f32.mrb[14].mxu0 }
 0x114   :  { %v256_v58 = vpop.f32.mrb[15].mxu0 }
 0x115   :  { %513 = vmatmul.mubr.f32.gmra.mrb[10].mxu1 %v782_v48 }
 0x116   :  { %517 = vmatprep.mubr.f32.mxu1 %v310_v56 }
 0x119   :  { %518 = vmatmul.mubr.f32.gmra.mrb[12].mxu1 %v236_v52 }
 0x11a   :  { %522 = vmatprep.mubr.f32.mxu1 %v311_v59 }
 0x11d   :  { %523 = vmatmul.mubr.f32.gmra.mrb[14].mxu1 %v785_v51 }
 0x11e   :  { %527 = vmatprep.mubr.f32.mxu1 %v312_v60 }
 0x121   :  { %528 = vmatmul.mubr.f32.gmra.mrb[16].mxu1 %v246_v55 }
 0x122   :  { %532 = vmatprep.mubr.f32.mxu1 %v313_v61 }
 0x125   :  { %533 = vmatmul.mubr.f32.gmra.mrb[18].mxu1 %v788_v54 }
 0x126   :  { %537 = vmatprep.mubr.f32.mxu1 %v314_v62 }
 0x129   :  { %538 = vmatmul.mubr.f32.gmra.mrb[20].mxu1 %v256_v58 }
 0x12a   :  { %542 = vmatprep.mubr.f32.mxu1 %v315_v63 }
 0x12d   :  { %543 = vmatmul.mubr.f32.gmra.mrb[22].mxu1 %v791_v57 }
 0x1cc   :  { %v688_v0 = vpop.f32.mrb[16].mxu0 }
 0x1cd   :  { %v689_v2 = vpop.f32.mrb[17].mxu0 }
 0x1ce   :  { %v690_v3 = vadd.f32 %v689_v2, %v688_v0 }
 0x1d0   :  { %v470_v4 = vadd.f32 %v690_v3, %v1169_v1  ;;  %v691_v5 = vpop.f32.mrb[18].mxu0 }
 0x1d1   :  { %v692_v6 = vpop.f32.mrb[19].mxu0 }
 0x1d2   :  { %v548_v7 = vmax.f32 %v470_v4, 0.0  ;;  %v693_v8 = vadd.f32 %v692_v6, %v691_v5 }
 0x1d4   :  { %564 = vst [vmem:[%s1240_s5] sm:$0xff] %v548_v7  ;;  %v475_v9 = vadd.f32 %v693_v8, %v1169_v1  ;;  %v694_v10 = vpop.f32.mrb[20].mxu0  ;;  %v700_v11 = vpop.f32.mrb[0].mxu1 }
 0x1d5   :  { %v695_v12 = vpop.f32.mrb[21].mxu0  ;;  %v701_v13 = vpop.f32.mrb[1].mxu1 }
 0x1d6   :  { %v549_v14 = vmax.f32 %v475_v9, 0.0  ;;  %v696_v15 = vadd.f32 %v695_v12, %v694_v10  ;;  %v702_v16 = vadd.f32 %v701_v13, %v700_v11 }
 0x1d8   :  { %565 = vst [vmem:[%s1240_s5 + $0x8] sm:$0xff] %v549_v14  ;;  %v480_v17 = vadd.f32 %v696_v15, %v1169_v1  ;;  %v490_v18 = vadd.f32 %v702_v16, %v1169_v1  ;;  %v697_v19 = vpop.f32.mrb[22].mxu0  ;;  %v703_v20 = vpop.f32.mrb[2].mxu1 }
 0x1d9   :  { %v698_v21 = vpop.f32.mrb[23].mxu0  ;;  %v704_v22 = vpop.f32.mrb[3].mxu1 }
 0x1da   :  { %v550_v23 = vmax.f32 %v480_v17, 0.0  ;;  %v552_v24 = vmax.f32 %v490_v18, 0.0  ;;  %v699_v25 = vadd.f32 %v698_v21, %v697_v19  ;;  %v705_v26 = vadd.f32 %v704_v22, %v703_v20 }
 0x1dc   :  { %566 = vst [vmem:[%s1240_s5 + $0x10] sm:$0xff] %v550_v23  ;;  %568 = vst [vmem:[%s1240_s5 + $0x20] sm:$0xff] %v552_v24  ;;  %v485_v27 = vadd.f32 %v699_v25, %v1169_v1  ;;  %v495_v28 = vadd.f32 %v705_v26, %v1169_v1  ;;  %v706_v29 = vpop.f32.mrb[4].mxu1 }
 0x1dd   :  { %v707_v30 = vpop.f32.mrb[5].mxu1 }
 0x1de   :  { %v551_v31 = vmax.f32 %v485_v27, 0.0  ;;  %v553_v32 = vmax.f32 %v495_v28, 0.0  ;;  %v708_v33 = vadd.f32 %v707_v30, %v706_v29 }
 0x1e0   :  { %567 = vst [vmem:[%s1240_s5 + $0x18] sm:$0xff] %v551_v31  ;;  %569 = vst [vmem:[%s1240_s5 + $0x28] sm:$0xff] %v553_v32  ;;  %v500_v34 = vadd.f32 %v708_v33, %v1169_v1  ;;  %v709_v35 = vpop.f32.mrb[6].mxu1 }
 0x1e1   :  { %v710_v36 = vpop.f32.mrb[7].mxu1 }
 0x1e2   :  { %v554_v37 = vmax.f32 %v500_v34, 0.0  ;;  %v711_v38 = vadd.f32 %v710_v36, %v709_v35 }
 0x1e4   :  { %570 = vst [vmem:[%s1240_s5 + $0x30] sm:$0xff] %v554_v37  ;;  %v505_v39 = vadd.f32 %v711_v38, %v1169_v1  ;;  %v712_v40 = vpop.f32.mrb[8].mxu1 }
 0x1e5   :  { %v713_v41 = vpop.f32.mrb[9].mxu1 }
 0x1e6   :  { %v555_v42 = vmax.f32 %v505_v39, 0.0  ;;  %v714_v43 = vadd.f32 %v713_v41, %v712_v40 }
 0x1e8   :  { %571 = vst [vmem:[%s1240_s5 + $0x38] sm:$0xff] %v555_v42  ;;  %v510_v44 = vadd.f32 %v714_v43, %v1169_v1  ;;  %v715_v45 = vpop.f32.mrb[10].mxu1 }
 0x1e9   :  { %v716_v46 = vpop.f32.mrb[11].mxu1 }
 0x1ea   :  { %v556_v47 = vmax.f32 %v510_v44, 0.0  ;;  %v717_v48 = vadd.f32 %v716_v46, %v715_v45 }
 0x1ec   :  { %572 = vst [vmem:[%s1240_s5 + $0x40] sm:$0xff] %v556_v47  ;;  %v515_v49 = vadd.f32 %v717_v48, %v1169_v1  ;;  %v718_v50 = vpop.f32.mrb[12].mxu1 }
 0x1ed   :  { %v719_v51 = vpop.f32.mrb[13].mxu1 }
 0x1ee   :  { %v557_v52 = vmax.f32 %v515_v49, 0.0  ;;  %v720_v53 = vadd.f32 %v719_v51, %v718_v50 }
 0x1f0   :  { %573 = vst [vmem:[%s1240_s5 + $0x48] sm:$0xff] %v557_v52  ;;  %v520_v54 = vadd.f32 %v720_v53, %v1169_v1  ;;  %v721_v55 = vpop.f32.mrb[14].mxu1 }
 0x1f1   :  { %v722_v56 = vpop.f32.mrb[15].mxu1 }
 0x1f2   :  { %v558_v57 = vmax.f32 %v520_v54, 0.0  ;;  %v723_v58 = vadd.f32 %v722_v56, %v721_v55 }
 0x1f4   :  { %574 = vst [vmem:[%s1240_s5 + $0x50] sm:$0xff] %v558_v57  ;;  %v525_v59 = vadd.f32 %v723_v58, %v1169_v1  ;;  %v724_v60 = vpop.f32.mrb[16].mxu1 }
 0x1f5   :  { %v725_v61 = vpop.f32.mrb[17].mxu1 }
 0x1f6   :  { %v559_v62 = vmax.f32 %v525_v59, 0.0  ;;  %v726_v63 = vadd.f32 %v725_v61, %v724_v60 }
 0x1f8   :  { %575 = vst [vmem:[%s1240_s5 + $0x58] sm:$0xff] %v559_v62  ;;  %v530_v0 = vadd.f32 %v726_v63, %v1169_v1  ;;  %v727_v2 = vpop.f32.mrb[18].mxu1 }
 0x1f9   :  { %v728_v3 = vpop.f32.mrb[19].mxu1 }
 0x1fa   :  { %v560_v4 = vmax.f32 %v530_v0, 0.0  ;;  %v729_v5 = vadd.f32 %v728_v3, %v727_v2 }
 0x1fc   :  { %576 = vst [vmem:[%s1240_s5 + $0x60] sm:$0xff] %v560_v4  ;;  %v535_v6 = vadd.f32 %v729_v5, %v1169_v1  ;;  %v730_v7 = vpop.f32.mrb[20].mxu1 }
 0x1fd   :  { %v731_v8 = vpop.f32.mrb[21].mxu1 }
 0x1fe   :  { %v561_v9 = vmax.f32 %v535_v6, 0.0  ;;  %v732_v10 = vadd.f32 %v731_v8, %v730_v7 }
 0x200   :  { %577 = vst [vmem:[%s1240_s5 + $0x68] sm:$0xff] %v561_v9  ;;  %v540_v11 = vadd.f32 %v732_v10, %v1169_v1  ;;  %v733_v12 = vpop.f32.mrb[22].mxu1 }
 0x201   :  { %v734_v13 = vpop.f32.mrb[23].mxu1 }
 0x202   :  { %v562_v14 = vmax.f32 %v540_v11, 0.0  ;;  %v735_v15 = vadd.f32 %v734_v13, %v733_v12 }
 0x204   :  { %578 = vst [vmem:[%s1240_s5 + $0x70] sm:$0xff] %v562_v14  ;;  %v545_v16 = vadd.f32 %v735_v15, %v1169_v1 }
 0x206   :  { %v563_v17 = vmax.f32 %v545_v16, 0.0 }
 0x208   :  { %579 = vst [vmem:[%s1240_s5 + $0x78] sm:$0xff] %v563_v17 }

// kernel: encoder_gnn_forward.3
= control target key start
LH: loop header
LB: loop body
LE: loop exit
PB: predicated region body
PF: predicated region fallthrough
CT: control target
= control target key end

     0   :  { %s1531_s1 = inlined_call_operand.vmem [shape: f32[128,128], index: 1, kind: input, shape index: {}, may-alias: {1,2}]   ;;  %s1532_s0 = inlined_call_operand.vmem [shape: bf16[128,128], index: 0, kind: input, shape index: {}]   ;;  %s1533_s3 = inlined_call_operand.vmem [shape: f32[256,128], index: 3, kind: input, shape index: {}]   ;;  %s1534_s2 = inlined_call_operand.vmem [shape: f32[128,128], index: 2, kind: input, shape index: {}, may-alias: {1,2}]   ;;  %s1535_s5 = inlined_call_operand.vmem [shape: f32[128,128], index: 5, kind: input, shape index: {}]   ;;  %s1536_s4 = inlined_call_operand.vmem [shape: f32[1,128], index: 4, kind: input, shape index: {}]   ;;  %s1537_s6 = inlined_call_operand.vmem [shape: f32[1,128], index: 6, kind: input, shape index: {}]   ;;  %s1538_s7 = inlined_call_operand.vmem [shape: f32[128,128], index: 7, kind: output, shape index: {}]  }
   0x1   :  { %v110_v0 = vld [vmem:[%s1531_s1] sm:$0xff]  ;;  %v111_v1 = vld [vmem:[%s1531_s1 + $0x8] sm:$0xff]  ;;  %v112_v2 = vld [vmem:[%s1531_s1 + $0x10] sm:$0xff] }
   0x2   :  { %v1055_v3 = vpack.c.bf16 %v111_v1, %v110_v0  ;;  %v113_v4 = vld [vmem:[%s1531_s1 + $0x18] sm:$0xff]  ;;  %v114_v6 = vld [vmem:[%s1531_s1 + $0x20] sm:$0xff]  ;;  %v115_v7 = vld [vmem:[%s1531_s1 + $0x28] sm:$0xff] }
   0x3   :  { %v1059_v5 = vpack.c.bf16 %v113_v4, %v112_v2  ;;  %v1063_v8 = vpack.c.bf16 %v115_v7, %v114_v6  ;;  %v1212_v9 = vld [vmem:[%s1532_s0] sm:$0xff]   ;;  %v116_v10 = vld [vmem:[%s1531_s1 + $0x30] sm:$0xff]  ;;  %v117_v11 = vld [vmem:[%s1531_s1 + $0x38] sm:$0xff] }
   0x4   :  { %1056 = vmatprep.subr.bf16.mxu0 %v1055_v3  ;;  %v762_v12 = vunpack.c.l.bf16 %v1212_v9  ;;  %v118_v13 = vld [vmem:[%s1531_s1 + $0x40] sm:$0xff]  ;;  %v387_v15 = vld [vmem:[%s1533_s3 + $0x88] sm:$0xff]  ;;  %v1067_v17 = vpack.c.bf16 %v117_v11, %v116_v10  ;;  %v388_v19 = vld [vmem:[%s1533_s3 + $0x90] sm:$0xff]  ;;  %v763_v4 = vunpack.c.h.bf16 %v1212_v9 }
   0x5   :  { %1058 = vmatpush3.bf16.msra.mxu0 %v1055_v3  ;;  %v386_v14 = vld [vmem:[%s1533_s3 + $0x80] sm:$0xff]  ;;  %v371_v18 = vld [vmem:[%s1533_s3 + $0x8] sm:$0xff]  ;;  %v389_v20 = vld [vmem:[%s1533_s3 + $0x98] sm:$0xff] }
   0x6   :  { %1060 = vmatprep.subr.bf16.mxu0 %v1059_v5  ;;  %975 = vmatprep.mubr.f32.mxu0 %v762_v12  ;;  %v370_v16 = vld [vmem:[%s1533_s3] sm:$0xff]  ;;  %v119_v21 = vld [vmem:[%s1531_s1 + $0x48] sm:$0xff]  ;;  %v1087_v22 = vpack.c.bf16 %v387_v15, %v386_v14  ;;  %v1091_v24 = vpack.c.bf16 %v389_v20, %v388_v19  ;;  %v372_v25 = vld [vmem:[%s1533_s3 + $0x10] sm:$0xff] }
   0x7   :  { %v1089_v23 = vpack.c.bf16 %v371_v18, %v370_v16  ;;  %v373_v26 = vld [vmem:[%s1533_s3 + $0x18] sm:$0xff]  ;;  %v390_v27 = vld [vmem:[%s1533_s3 + $0xa0] sm:$0xff]  ;;  %v391_v28 = vld [vmem:[%s1533_s3 + $0xa8] sm:$0xff]  ;;  %v1071_v29 = vpack.c.bf16 %v119_v21, %v118_v13 }
   0x8   :  { %1088 = vmatprep.subr.bf16.mxu1 %v1087_v22  ;;  %v120_v30 = vld [vmem:[%s1531_s1 + $0x50] sm:$0xff]  ;;  %v1093_v31 = vpack.c.bf16 %v373_v26, %v372_v25  ;;  %v121_v32 = vld [vmem:[%s1531_s1 + $0x58] sm:$0xff]  ;;  %v1095_v33 = vpack.c.bf16 %v391_v28, %v390_v27  ;;  %v374_v34 = vld [vmem:[%s1533_s3 + $0x20] sm:$0xff] }
   0x9   :  { %1062 = vmatpush3.bf16.msra.mxu0 %v1059_v5  ;;  %1090 = vmatpush3.bf16.msra.mxu1 %v1089_v23  ;;  %v375_v35 = vld [vmem:[%s1533_s3 + $0x28] sm:$0xff]  ;;  %v392_v36 = vld [vmem:[%s1533_s3 + $0xb0] sm:$0xff]  ;;  %v393_v37 = vld [vmem:[%s1533_s3 + $0xb8] sm:$0xff]  ;;  %v1075_v38 = vpack.c.bf16 %v121_v32, %v120_v30 }
   0xa   :  { %1064 = vmatprep.subr.bf16.mxu0 %v1063_v8  ;;  %1092 = vmatprep.subr.bf16.mxu1 %v1091_v24  ;;  %v122_v39 = vld [vmem:[%s1531_s1 + $0x60] sm:$0xff]  ;;  %v1097_v40 = vpack.c.bf16 %v375_v35, %v374_v34  ;;  %v123_v41 = vld [vmem:[%s1531_s1 + $0x68] sm:$0xff]  ;;  %v1099_v42 = vpack.c.bf16 %v393_v37, %v392_v36  ;;  %v376_v43 = vld [vmem:[%s1533_s3 + $0x30] sm:$0xff] }
   0xb   :  { %v377_v44 = vld [vmem:[%s1533_s3 + $0x38] sm:$0xff]  ;;  %v394_v45 = vld [vmem:[%s1533_s3 + $0xc0] sm:$0xff]  ;;  %v395_v46 = vld [vmem:[%s1533_s3 + $0xc8] sm:$0xff]  ;;  %v1079_v47 = vpack.c.bf16 %v123_v41, %v122_v39 }
   0xc   :  { %v124_v48 = vld [vmem:[%s1531_s1 + $0x70] sm:$0xff]  ;;  %v1101_v49 = vpack.c.bf16 %v377_v44, %v376_v43  ;;  %v125_v50 = vld [vmem:[%s1531_s1 + $0x78] sm:$0xff]  ;;  %v1103_v51 = vpack.c.bf16 %v395_v46, %v394_v45  ;;  %v378_v52 = vld [vmem:[%s1533_s3 + $0x40] sm:$0xff] }
   0xd   :  { %1066 = vmatpush3.bf16.msra.mxu0 %v1063_v8  ;;  %1094 = vmatpush3.bf16.msra.mxu1 %v1093_v31  ;;  %v379_v53 = vld [vmem:[%s1533_s3 + $0x48] sm:$0xff]  ;;  %v396_v54 = vld [vmem:[%s1533_s3 + $0xd0] sm:$0xff]  ;;  %v397_v55 = vld [vmem:[%s1533_s3 + $0xd8] sm:$0xff]  ;;  %v1083_v56 = vpack.c.bf16 %v125_v50, %v124_v48 }
   0xe   :  { %1068 = vmatprep.subr.bf16.mxu0 %v1067_v17  ;;  %1096 = vmatprep.subr.bf16.mxu1 %v1095_v33  ;;  %v1105_v57 = vpack.c.bf16 %v379_v53, %v378_v52  ;;  %v1107_v58 = vpack.c.bf16 %v397_v55, %v396_v54  ;;  %v380_v59 = vld [vmem:[%s1533_s3 + $0x50] sm:$0xff]  ;;  %v381_v60 = vld [vmem:[%s1533_s3 + $0x58] sm:$0xff]  ;;  %v398_v61 = vld [vmem:[%s1533_s3 + $0xe0] sm:$0xff] }
   0xf   :  { %v399_v62 = vld [vmem:[%s1533_s3 + $0xe8] sm:$0xff]  ;;  %v1109_v0 = vpack.c.bf16 %v381_v60, %v380_v59  ;;  %v382_v2 = vld [vmem:[%s1533_s3 + $0x60] sm:$0xff]  ;;  %v400_v5 = vld [vmem:[%s1533_s3 + $0xf0] sm:$0xff] }
  0x10   :  { %v792_v63 = vld [vmem:[%s1532_s0 + $0x8] sm:$0xff]   ;;  %v1111_v1 = vpack.c.bf16 %v399_v62, %v398_v61  ;;  %v401_v6 = vld [vmem:[%s1533_s3 + $0xf8] sm:$0xff]  ;;  %v793_v8 = vld [vmem:[%s1532_s0 + $0x10] sm:$0xff]  }
  0x11   :  { %1070 = vmatpush3.bf16.msra.mxu0 %v1067_v17  ;;  %1098 = vmatpush3.bf16.msra.mxu1 %v1097_v40  ;;  %v383_v3 = vld [vmem:[%s1533_s3 + $0x68] sm:$0xff]  ;;  %v766_v7 = vunpack.c.l.bf16 %v792_v63  ;;  %v1115_v11 = vpack.c.bf16 %v401_v6, %v400_v5  ;;  %v384_v9 = vld [vmem:[%s1533_s3 + $0x70] sm:$0xff]  ;;  %v385_v12 = vld [vmem:[%s1533_s3 + $0x78] sm:$0xff]  ;;  %v767_v13 = vunpack.c.h.bf16 %v792_v63  ;;  %v770_v14 = vunpack.c.l.bf16 %v793_v8 }
  0x12   :  { %1072 = vmatprep.subr.bf16.mxu0 %v1071_v29  ;;  %1100 = vmatprep.subr.bf16.mxu1 %v1099_v42  ;;  %v1113_v10 = vpack.c.bf16 %v383_v3, %v382_v2  ;;  %v794_v15 = vld [vmem:[%s1532_s0 + $0x18] sm:$0xff]   ;;  %v1117_v16 = vpack.c.bf16 %v385_v12, %v384_v9  ;;  %v771_v17 = vunpack.c.h.bf16 %v793_v8  ;;  %v795_v19 = vld [vmem:[%s1532_s0 + $0x20] sm:$0xff]   ;;  %v796_v22 = vld [vmem:[%s1532_s0 + $0x28] sm:$0xff]  }
  0x13   :  { %v774_v18 = vunpack.c.l.bf16 %v794_v15  ;;  %v775_v20 = vunpack.c.h.bf16 %v794_v15  ;;  %v778_v21 = vunpack.c.l.bf16 %v795_v19  ;;  %v779_v23 = vunpack.c.h.bf16 %v795_v19  ;;  %v797_v25 = vld [vmem:[%s1532_s0 + $0x30] sm:$0xff]   ;;  %v798_v28 = vld [vmem:[%s1532_s0 + $0x38] sm:$0xff]   ;;  %v306_v32 = vld [vmem:[%s1534_s2] sm:$0xff] }
  0x14   :  { %v782_v24 = vunpack.c.l.bf16 %v796_v22  ;;  %v783_v26 = vunpack.c.h.bf16 %v796_v22  ;;  %v786_v27 = vunpack.c.l.bf16 %v797_v25  ;;  %v790_v30 = vunpack.c.l.bf16 %v798_v28  ;;  %473 = vmatprep.mubr.f32.mxu1 %v306_v32  ;;  %v570_v33 = vld [vmem:[%s1535_s5] sm:$0xff]  ;;  %v571_v34 = vld [vmem:[%s1535_s5 + $0x8] sm:$0xff]  ;;  %v572_v35 = vld [vmem:[%s1535_s5 + $0x10] sm:$0xff] }
  0x15   :  { %1074 = vmatpush3.bf16.msra.mxu0 %v1071_v29  ;;  %1102 = vmatpush3.bf16.msra.mxu1 %v1101_v49  ;;  %v787_v29 = vunpack.c.h.bf16 %v797_v25  ;;  %v791_v31 = vunpack.c.h.bf16 %v798_v28  ;;  %v1119_v36 = vpack.c.bf16 %v571_v34, %v570_v33  ;;  %v573_v37 = vld [vmem:[%s1535_s5 + $0x18] sm:$0xff]  ;;  %v574_v39 = vld [vmem:[%s1535_s5 + $0x20] sm:$0xff]  ;;  %v575_v40 = vld [vmem:[%s1535_s5 + $0x28] sm:$0xff] }
  0x16   :  { %1076 = vmatprep.subr.bf16.mxu0 %v1075_v38  ;;  %1104 = vmatprep.subr.bf16.mxu1 %v1103_v51  ;;  %v1127_v41 = vpack.c.bf16 %v575_v40, %v574_v39  ;;  %v576_v42 = vld [vmem:[%s1535_s5 + $0x30] sm:$0xff]  ;;  %v577_v43 = vld [vmem:[%s1535_s5 + $0x38] sm:$0xff]  ;;  %v578_v45 = vld [vmem:[%s1535_s5 + $0x40] sm:$0xff] }
  0x17   :  { %v1131_v44 = vpack.c.bf16 %v577_v43, %v576_v42  ;;  %v579_v46 = vld [vmem:[%s1535_s5 + $0x48] sm:$0xff]  ;;  %v308_v52 = vld [vmem:[%s1534_s2 + $0x10] sm:$0xff]  ;;  %v309_v54 = vld [vmem:[%s1534_s2 + $0x18] sm:$0xff] }
  0x18   :  { %v307_v49 = vld [vmem:[%s1534_s2 + $0x8] sm:$0xff]  ;;  %v312_v63 = vld [vmem:[%s1534_s2 + $0x30] sm:$0xff]  ;;  %v313_v2 = vld [vmem:[%s1534_s2 + $0x38] sm:$0xff] }
  0x19   :  { %1078 = vmatpush3.bf16.msra.mxu0 %v1075_v38  ;;  %1106 = vmatpush3.bf16.msra.mxu1 %v1105_v57  ;;  %v1123_v38 = vpack.c.bf16 %v573_v37, %v572_v35  ;;  %v310_v57 = vld [vmem:[%s1534_s2 + $0x20] sm:$0xff]  ;;  %v311_v60 = vld [vmem:[%s1534_s2 + $0x28] sm:$0xff]  ;;  %v580_v15 = vld [vmem:[%s1535_s5 + $0x50] sm:$0xff] }
  0x1a   :  { %1080 = vmatprep.subr.bf16.mxu0 %v1079_v47  ;;  %1108 = vmatprep.subr.bf16.mxu1 %v1107_v58  ;;  %v314_v5 = vld [vmem:[%s1534_s2 + $0x40] sm:$0xff]  ;;  %v315_v8 = vld [vmem:[%s1534_s2 + $0x48] sm:$0xff]  ;;  %v585_v22 = vld [vmem:[%s1535_s5 + $0x78] sm:$0xff] }
  0x1b   :  { %v318_v9 = vld [vmem:[%s1534_s2 + $0x60] sm:$0xff]  ;;  %v319_v12 = vld [vmem:[%s1534_s2 + $0x68] sm:$0xff] }
  0x1c   :  { %v583_v19 = vld [vmem:[%s1535_s5 + $0x68] sm:$0xff]  ;;  %v1462_v25 = vld [vmem:[%s1536_s4] ss:$0 sm:$0xff] }
  0x1d   :  { %1082 = vmatpush3.bf16.msra.mxu0 %v1079_v47  ;;  %1110 = vmatpush3.bf16.msra.mxu1 %v1109_v0  ;;  %v1135_v47 = vpack.c.bf16 %v579_v46, %v578_v45 }
  0x1e   :  { %1084 = vmatprep.subr.bf16.mxu0 %v1083_v56  ;;  %1112 = vmatprep.subr.bf16.mxu1 %v1111_v1 }
  0x21   :  { %1086 = vmatpush3.bf16.msra.mxu0 %v1083_v56  ;;  %1114 = vmatpush3.bf16.msra.mxu1 %v1113_v10  ;;  %v316_v10 = vld [vmem:[%s1534_s2 + $0x50] sm:$0xff] }
  0x22   :  { %1116 = vmatprep.subr.bf16.mxu1 %v1115_v11  ;;  %1120 = vmatprep.subr.bf16.mxu0 %v1119_v36  ;;  %v317_v11 = vld [vmem:[%s1534_s2 + $0x58] sm:$0xff] }
  0x24   :  { %976 = vmatmul.mubr.f32.vlgmr.msra.gmra.mrb[0].mxu0 %v763_v4 }
  0x25   :  { %978 = vmatprep.mubr.f32.mxu0 %v766_v7  ;;  %1118 = vmatpush3.bf16.msra.mxu1 %v1117_v16  ;;  %v581_v16 = vld [vmem:[%s1535_s5 + $0x58] sm:$0xff] }
  0x26   :  { %1122 = vmatpush3.bf16.msra.mxu0 %v1119_v36 }
  0x27   :  { %1124 = vmatprep.subr.bf16.mxu0 %v1123_v38 }
  0x28   :  { %979 = vmatmul.mubr.f32.gmra.mrb[2].mxu0 %v767_v13  ;;  %v320_v13 = vld [vmem:[%s1534_s2 + $0x70] sm:$0xff] }
  0x29   :  { %981 = vmatprep.mubr.f32.mxu0 %v770_v14  ;;  %v321_v14 = vld [vmem:[%s1534_s2 + $0x78] sm:$0xff] }
  0x2a   :  { %1126 = vmatpush3.bf16.msra.mxu0 %v1123_v38 }
  0x2b   :  { %1128 = vmatprep.subr.bf16.mxu0 %v1127_v41 }
  0x2c   :  { %982 = vmatmul.mubr.f32.gmra.mrb[4].mxu0 %v771_v17  ;;  %v1139_v17 = vpack.c.bf16 %v581_v16, %v580_v15 }
  0x2d   :  { %984 = vmatprep.mubr.f32.mxu0 %v774_v18  ;;  %v582_v18 = vld [vmem:[%s1535_s5 + $0x60] sm:$0xff] }
  0x2e   :  { %1130 = vmatpush3.bf16.msra.mxu0 %v1127_v41 }
  0x2f   :  { %1132 = vmatprep.subr.bf16.mxu0 %v1131_v44 }
  0x30   :  { %985 = vmatmul.mubr.f32.gmra.mrb[6].mxu0 %v775_v20  ;;  %v1143_v20 = vpack.c.bf16 %v583_v19, %v582_v18 }
  0x31   :  { %987 = vmatprep.mubr.f32.mxu0 %v778_v21  ;;  %v584_v21 = vld [vmem:[%s1535_s5 + $0x70] sm:$0xff] }
  0x32   :  { %1134 = vmatpush3.bf16.msra.mxu0 %v1131_v44 }
  0x33   :  { %1136 = vmatprep.subr.bf16.mxu0 %v1135_v47 }
  0x34   :  { %988 = vmatmul.mubr.f32.gmra.mrb[8].mxu0 %v779_v23  ;;  %v1147_v23 = vpack.c.bf16 %v585_v22, %v584_v21 }
  0x35   :  { %990 = vmatprep.mubr.f32.mxu0 %v782_v24 }
  0x36   :  { %1138 = vmatpush3.bf16.msra.mxu0 %v1135_v47 }
  0x37   :  { %1140 = vmatprep.subr.bf16.mxu0 %v1139_v17 }
  0x38   :  { %991 = vmatmul.mubr.f32.gmra.mrb[10].mxu0 %v783_v26 }
  0x39   :  { %993 = vmatprep.mubr.f32.mxu0 %v786_v27 }
  0x3a   :  { %1142 = vmatpush3.bf16.msra.mxu0 %v1139_v17 }
  0x3b   :  { %1144 = vmatprep.subr.bf16.mxu0 %v1143_v20 }
  0x3c   :  { %994 = vmatmul.mubr.f32.gmra.mrb[12].mxu0 %v787_v29 }
  0x3d   :  { %996 = vmatprep.mubr.f32.mxu0 %v790_v30 }
  0x3e   :  { %1146 = vmatpush3.bf16.msra.mxu0 %v1143_v20 }
  0x3f   :  { %1148 = vmatprep.subr.bf16.mxu0 %v1147_v23 }
  0x40   :  { %997 = vmatmul.mubr.f32.gmra.mrb[14].mxu0 %v791_v31 }
  0x42   :  { %1150 = vmatpush3.bf16.msra.mxu0 %v1147_v23 }
  0xf7   :  { %v977_v48 = vpop.f32.mrb[0].mxu0 }
  0xf8   :  { %v192_v50 = vpop.f32.mrb[1].mxu0 }
  0xf9   :  { %474 = vmatmul.mubr.f32.vlgmr.msra.gmra.mrb[0].mxu1 %v192_v50 }
  0xfa   :  { %478 = vmatprep.mubr.f32.mxu1 %v307_v49 }
  0xfb   :  { %v980_v51 = vpop.f32.mrb[2].mxu0 }
  0xfc   :  { %v202_v53 = vpop.f32.mrb[3].mxu0 }
  0xfd   :  { %479 = vmatmul.mubr.f32.gmra.mrb[2].mxu1 %v977_v48 }
  0xfe   :  { %483 = vmatprep.mubr.f32.mxu1 %v308_v52 }
  0xff   :  { %v983_v55 = vpop.f32.mrb[4].mxu0 }
 0x100   :  { %v212_v56 = vpop.f32.mrb[5].mxu0 }
 0x101   :  { %484 = vmatmul.mubr.f32.gmra.mrb[4].mxu1 %v202_v53 }
 0x102   :  { %488 = vmatprep.mubr.f32.mxu1 %v309_v54 }
 0x103   :  { %v986_v58 = vpop.f32.mrb[6].mxu0 }
 0x104   :  { %v222_v59 = vpop.f32.mrb[7].mxu0 }
 0x105   :  { %489 = vmatmul.mubr.f32.gmra.mrb[6].mxu1 %v980_v51 }
 0x106   :  { %493 = vmatprep.mubr.f32.mxu1 %v310_v57 }
 0x107   :  { %v989_v61 = vpop.f32.mrb[8].mxu0 }
 0x108   :  { %v232_v62 = vpop.f32.mrb[9].mxu0 }
 0x109   :  { %494 = vmatmul.mubr.f32.gmra.mrb[8].mxu1 %v212_v56 }
 0x10a   :  { %498 = vmatprep.mubr.f32.mxu1 %v311_v60 }
 0x10b   :  { %v992_v0 = vpop.f32.mrb[10].mxu0 }
 0x10c   :  { %v242_v1 = vpop.f32.mrb[11].mxu0 }
 0x10d   :  { %499 = vmatmul.mubr.f32.gmra.mrb[10].mxu1 %v983_v55 }
 0x10e   :  { %503 = vmatprep.mubr.f32.mxu1 %v312_v63 }
 0x10f   :  { %v995_v3 = vpop.f32.mrb[12].mxu0 }
 0x110   :  { %v252_v4 = vpop.f32.mrb[13].mxu0 }
 0x111   :  { %504 = vmatmul.mubr.f32.gmra.mrb[12].mxu1 %v222_v59 }
 0x112   :  { %508 = vmatprep.mubr.f32.mxu1 %v313_v2 }
 0x113   :  { %v998_v6 = vpop.f32.mrb[14].mxu0 }
 0x114   :  { %v262_v7 = vpop.f32.mrb[15].mxu0 }
 0x115   :  { %509 = vmatmul.mubr.f32.gmra.mrb[14].mxu1 %v986_v58 }
 0x116   :  { %513 = vmatprep.mubr.f32.mxu1 %v314_v5 }
 0x119   :  { %514 = vmatmul.mubr.f32.gmra.mrb[16].mxu1 %v232_v62 }
 0x11a   :  { %518 = vmatprep.mubr.f32.mxu1 %v315_v8 }
 0x11d   :  { %519 = vmatmul.mubr.f32.gmra.mrb[18].mxu1 %v989_v61 }
 0x11e   :  { %523 = vmatprep.mubr.f32.mxu1 %v316_v10 }
 0x121   :  { %524 = vmatmul.mubr.f32.gmra.mrb[20].mxu1 %v242_v1 }
 0x122   :  { %528 = vmatprep.mubr.f32.mxu1 %v317_v11 }
 0x125   :  { %529 = vmatmul.mubr.f32.gmra.mrb[22].mxu1 %v992_v0 }
 0x126   :  { %533 = vmatprep.mubr.f32.mxu1 %v318_v9 }
 0x129   :  { %534 = vmatmul.mubr.f32.gmra.mrb[24].mxu1 %v252_v4 }
 0x12a   :  { %538 = vmatprep.mubr.f32.mxu1 %v319_v12 }
 0x12d   :  { %539 = vmatmul.mubr.f32.gmra.mrb[26].mxu1 %v995_v3 }
 0x12e   :  { %543 = vmatprep.mubr.f32.mxu1 %v320_v13 }
 0x131   :  { %544 = vmatmul.mubr.f32.gmra.mrb[28].mxu1 %v262_v7 }
 0x132   :  { %548 = vmatprep.mubr.f32.mxu1 %v321_v14 }
 0x135   :  { %549 = vmatmul.mubr.f32.gmra.mrb[30].mxu1 %v998_v6 }
 0x1cc   :  { %v863_v24 = vpop.f32.mrb[0].mxu1 }
 0x1cd   :  { %v864_v26 = vpop.f32.mrb[1].mxu1 }
 0x1ce   :  { %v865_v27 = vadd.f32 %v864_v26, %v863_v24 }
 0x1d0   :  { %v476_v28 = vadd.f32 %v865_v27, %v1462_v25  ;;  %v866_v29 = vpop.f32.mrb[2].mxu1 }
 0x1d1   :  { %v867_v30 = vpop.f32.mrb[3].mxu1 }
 0x1d2   :  { %v554_v31 = vmax.f32 %v476_v28, 0.0  ;;  %v868_v32 = vadd.f32 %v867_v30, %v866_v29 }
 0x1d4   :  { %v481_v33 = vadd.f32 %v868_v32, %v1462_v25  ;;  %v869_v34 = vpop.f32.mrb[4].mxu1  ;;  %1031 = vmatprep.mubr.f32.mxu0 %v554_v31 }
 0x1d5   :  { %v870_v35 = vpop.f32.mrb[5].mxu1 }
 0x1d6   :  { %v555_v36 = vmax.f32 %v481_v33, 0.0  ;;  %v871_v37 = vadd.f32 %v870_v35, %v869_v34 }
 0x1d8   :  { %v486_v38 = vadd.f32 %v871_v37, %v1462_v25  ;;  %v872_v39 = vpop.f32.mrb[6].mxu1  ;;  %1032 = vmatmul.mubr.f32.vlgmr.msra.gmra.mrb[16].mxu0 %v555_v36 }
 0x1d9   :  { %v873_v40 = vpop.f32.mrb[7].mxu1 }
 0x1da   :  { %v556_v41 = vmax.f32 %v486_v38, 0.0  ;;  %v874_v42 = vadd.f32 %v873_v40, %v872_v39 }
 0x1dc   :  { %v491_v43 = vadd.f32 %v874_v42, %v1462_v25  ;;  %v875_v44 = vpop.f32.mrb[8].mxu1  ;;  %1034 = vmatprep.mubr.f32.mxu0 %v556_v41  ;;  %v759_v42 = vld [vmem:[%s1537_s6] ss:$0 sm:$0xff] }
 0x1dd   :  { %v876_v45 = vpop.f32.mrb[9].mxu1 }
 0x1de   :  { %v557_v46 = vmax.f32 %v491_v43, 0.0  ;;  %v877_v47 = vadd.f32 %v876_v45, %v875_v44 }
 0x1e0   :  { %v496_v48 = vadd.f32 %v877_v47, %v1462_v25  ;;  %v878_v49 = vpop.f32.mrb[10].mxu1  ;;  %1035 = vmatmul.mubr.f32.gmra.mrb[18].mxu0 %v557_v46 }
 0x1e1   :  { %v879_v50 = vpop.f32.mrb[11].mxu1 }
 0x1e2   :  { %v558_v51 = vmax.f32 %v496_v48, 0.0  ;;  %v880_v52 = vadd.f32 %v879_v50, %v878_v49 }
 0x1e4   :  { %v501_v53 = vadd.f32 %v880_v52, %v1462_v25  ;;  %v881_v54 = vpop.f32.mrb[12].mxu1  ;;  %1037 = vmatprep.mubr.f32.mxu0 %v558_v51 }
 0x1e5   :  { %v882_v55 = vpop.f32.mrb[13].mxu1 }
 0x1e6   :  { %v559_v56 = vmax.f32 %v501_v53, 0.0  ;;  %v883_v57 = vadd.f32 %v882_v55, %v881_v54 }
 0x1e8   :  { %v506_v58 = vadd.f32 %v883_v57, %v1462_v25  ;;  %v884_v59 = vpop.f32.mrb[14].mxu1  ;;  %1038 = vmatmul.mubr.f32.gmra.mrb[20].mxu0 %v559_v56 }
 0x1e9   :  { %v885_v60 = vpop.f32.mrb[15].mxu1 }
 0x1ea   :  { %v560_v61 = vmax.f32 %v506_v58, 0.0  ;;  %v886_v62 = vadd.f32 %v885_v60, %v884_v59 }
 0x1ec   :  { %v511_v63 = vadd.f32 %v886_v62, %v1462_v25  ;;  %v887_v0 = vpop.f32.mrb[16].mxu1  ;;  %1040 = vmatprep.mubr.f32.mxu0 %v560_v61 }
 0x1ed   :  { %v888_v1 = vpop.f32.mrb[17].mxu1 }
 0x1ee   :  { %v561_v2 = vmax.f32 %v511_v63, 0.0  ;;  %v889_v3 = vadd.f32 %v888_v1, %v887_v0 }
 0x1f0   :  { %v516_v4 = vadd.f32 %v889_v3, %v1462_v25  ;;  %v890_v5 = vpop.f32.mrb[18].mxu1  ;;  %1041 = vmatmul.mubr.f32.gmra.mrb[22].mxu0 %v561_v2 }
 0x1f1   :  { %v891_v6 = vpop.f32.mrb[19].mxu1 }
 0x1f2   :  { %v562_v7 = vmax.f32 %v516_v4, 0.0  ;;  %v892_v8 = vadd.f32 %v891_v6, %v890_v5 }
 0x1f4   :  { %v521_v10 = vadd.f32 %v892_v8, %v1462_v25  ;;  %v893_v11 = vpop.f32.mrb[20].mxu1  ;;  %1043 = vmatprep.mubr.f32.mxu0 %v562_v7 }
 0x1f5   :  { %v894_v9 = vpop.f32.mrb[21].mxu1 }
 0x1f6   :  { %v563_v12 = vmax.f32 %v521_v10, 0.0  ;;  %v895_v13 = vadd.f32 %v894_v9, %v893_v11 }
 0x1f8   :  { %v526_v14 = vadd.f32 %v895_v13, %v1462_v25  ;;  %v896_v15 = vpop.f32.mrb[22].mxu1  ;;  %1044 = vmatmul.mubr.f32.gmra.mrb[24].mxu0 %v563_v12 }
 0x1f9   :  { %v897_v16 = vpop.f32.mrb[23].mxu1 }
 0x1fa   :  { %v564_v17 = vmax.f32 %v526_v14, 0.0  ;;  %v898_v18 = vadd.f32 %v897_v16, %v896_v15 }
 0x1fc   :  { %v531_v19 = vadd.f32 %v898_v18, %v1462_v25  ;;  %v899_v20 = vpop.f32.mrb[24].mxu1  ;;  %1046 = vmatprep.mubr.f32.mxu0 %v564_v17 }
 0x1fd   :  { %v900_v21 = vpop.f32.mrb[25].mxu1 }
 0x1fe   :  { %v565_v22 = vmax.f32 %v531_v19, 0.0  ;;  %v901_v23 = vadd.f32 %v900_v21, %v899_v20 }
 0x200   :  { %v536_v24 = vadd.f32 %v901_v23, %v1462_v25  ;;  %v902_v26 = vpop.f32.mrb[26].mxu1  ;;  %1047 = vmatmul.mubr.f32.gmra.mrb[26].mxu0 %v565_v22 }
 0x201   :  { %v903_v27 = vpop.f32.mrb[27].mxu1 }
 0x202   :  { %v566_v28 = vmax.f32 %v536_v24, 0.0  ;;  %v904_v29 = vadd.f32 %v903_v27, %v902_v26 }
 0x204   :  { %v541_v30 = vadd.f32 %v904_v29, %v1462_v25  ;;  %v905_v31 = vpop.f32.mrb[28].mxu1  ;;  %1049 = vmatprep.mubr.f32.mxu0 %v566_v28 }
 0x205   :  { %v906_v32 = vpop.f32.mrb[29].mxu1 }
 0x206   :  { %v567_v33 = vmax.f32 %v541_v30, 0.0  ;;  %v907_v34 = vadd.f32 %v906_v32, %v905_v31 }
 0x208   :  { %v546_v35 = vadd.f32 %v907_v34, %v1462_v25  ;;  %v908_v36 = vpop.f32.mrb[30].mxu1  ;;  %1050 = vmatmul.mubr.f32.gmra.mrb[28].mxu0 %v567_v33 }
 0x209   :  { %v909_v37 = vpop.f32.mrb[31].mxu1 }
 0x20a   :  { %v568_v38 = vmax.f32 %v546_v35, 0.0  ;;  %v910_v39 = vadd.f32 %v909_v37, %v908_v36 }
 0x20c   :  { %v551_v40 = vadd.f32 %v910_v39, %v1462_v25  ;;  %1052 = vmatprep.mubr.f32.mxu0 %v568_v38 }
 0x20e   :  { %v569_v41 = vmax.f32 %v551_v40, 0.0 }
 0x210   :  { %1053 = vmatmul.mubr.f32.gmra.mrb[30].mxu0 %v569_v41 }
 0x2ab   :  { %v1033_v43 = vpop.f32.mrb[16].mxu0 }
 0x2ac   :  { %v665_v44 = vadd.f32 %v1033_v43, %v759_v42  ;;  %v659_v45 = vpop.f32.mrb[17].mxu0 }
 0x2ad   :  { %v660_v46 = vadd.f32 %v759_v42, %v659_v45 }
 0x2ae   :  { %739 = vst [vmem:[%s1538_s7 + $0x8] sm:$0xff] %v665_v44 }
 0x2af   :  { %738 = vst [vmem:[%s1538_s7] sm:$0xff] %v660_v46 }
 0x2b3   :  { %v1036_v25 = vpop.f32.mrb[18].mxu0 }
 0x2b4   :  { %v675_v47 = vadd.f32 %v1036_v25, %v759_v42  ;;  %v669_v48 = vpop.f32.mrb[19].mxu0 }
 0x2b5   :  { %v670_v49 = vadd.f32 %v759_v42, %v669_v48 }
 0x2b6   :  { %741 = vst [vmem:[%s1538_s7 + $0x18] sm:$0xff] %v675_v47 }
 0x2b7   :  { %740 = vst [vmem:[%s1538_s7 + $0x10] sm:$0xff] %v670_v49 }
 0x2bb   :  { %v1039_v50 = vpop.f32.mrb[20].mxu0 }
 0x2bc   :  { %v685_v51 = vadd.f32 %v1039_v50, %v759_v42  ;;  %v679_v52 = vpop.f32.mrb[21].mxu0 }
 0x2bd   :  { %v680_v53 = vadd.f32 %v759_v42, %v679_v52 }
 0x2be   :  { %743 = vst [vmem:[%s1538_s7 + $0x28] sm:$0xff] %v685_v51 }
 0x2bf   :  { %742 = vst [vmem:[%s1538_s7 + $0x20] sm:$0xff] %v680_v53 }
 0x2c3   :  { %v1042_v54 = vpop.f32.mrb[22].mxu0 }
 0x2c4   :  { %v695_v55 = vadd.f32 %v1042_v54, %v759_v42  ;;  %v689_v56 = vpop.f32.mrb[23].mxu0 }
 0x2c5   :  { %v690_v57 = vadd.f32 %v759_v42, %v689_v56 }
 0x2c6   :  { %745 = vst [vmem:[%s1538_s7 + $0x38] sm:$0xff] %v695_v55 }
 0x2c7   :  { %744 = vst [vmem:[%s1538_s7 + $0x30] sm:$0xff] %v690_v57 }
 0x2cb   :  { %v1045_v58 = vpop.f32.mrb[24].mxu0 }
 0x2cc   :  { %v705_v59 = vadd.f32 %v1045_v58, %v759_v42  ;;  %v699_v60 = vpop.f32.mrb[25].mxu0 }
 0x2cd   :  { %v700_v61 = vadd.f32 %v759_v42, %v699_v60 }
 0x2ce   :  { %747 = vst [vmem:[%s1538_s7 + $0x48] sm:$0xff] %v705_v59 }
 0x2cf   :  { %746 = vst [vmem:[%s1538_s7 + $0x40] sm:$0xff] %v700_v61 }
 0x2d3   :  { %v1048_v62 = vpop.f32.mrb[26].mxu0 }
 0x2d4   :  { %v715_v63 = vadd.f32 %v1048_v62, %v759_v42  ;;  %v709_v0 = vpop.f32.mrb[27].mxu0 }
 0x2d5   :  { %v710_v1 = vadd.f32 %v759_v42, %v709_v0 }
 0x2d6   :  { %749 = vst [vmem:[%s1538_s7 + $0x58] sm:$0xff] %v715_v63 }
 0x2d7   :  { %748 = vst [vmem:[%s1538_s7 + $0x50] sm:$0xff] %v710_v1 }
 0x2db   :  { %v1051_v2 = vpop.f32.mrb[28].mxu0 }
 0x2dc   :  { %v725_v3 = vadd.f32 %v1051_v2, %v759_v42  ;;  %v719_v4 = vpop.f32.mrb[29].mxu0 }
 0x2dd   :  { %v720_v5 = vadd.f32 %v759_v42, %v719_v4 }
 0x2de   :  { %751 = vst [vmem:[%s1538_s7 + $0x68] sm:$0xff] %v725_v3 }
 0x2df   :  { %750 = vst [vmem:[%s1538_s7 + $0x60] sm:$0xff] %v720_v5 }
 0x2e3   :  { %v1054_v6 = vpop.f32.mrb[30].mxu0 }
 0x2e4   :  { %v735_v7 = vadd.f32 %v1054_v6, %v759_v42  ;;  %v729_v8 = vpop.f32.mrb[31].mxu0 }
 0x2e5   :  { %v730_v10 = vadd.f32 %v759_v42, %v729_v8 }
 0x2e6   :  { %753 = vst [vmem:[%s1538_s7 + $0x78] sm:$0xff] %v735_v7 }
 0x2e7   :  { %752 = vst [vmem:[%s1538_s7 + $0x70] sm:$0xff] %v730_v10 }

</bundles_post_ra>
